<compile_context>
chip_gen: v6e
topology: v6e:2x2x1
jax: 0.10.0
libtpu: 0.0.40
codegen_flags: <defaults>
</compile_context>

<pallas_src>
import functools
import math

import jax
import jax.numpy as jnp
from jax.experimental import pallas as pl
from jax.experimental.pallas import tpu as pltpu


def _cdan_kernel(fs_ref, gs_ref, ft_ref, gt_ref,
                 w1_ref, b1_ref, w2_ref, b2_ref, w3_ref, b3_ref,
                 loss_ref, acc_ref,
                 *, n_cls, tile_b, batch_per_domain, eps, mm_dtype):
    pid = pl.program_id(0)

    @pl.when(pid == 0)
    def _init():
        loss_ref[...] = jnp.zeros_like(loss_ref)
        acc_ref[...] = jnp.zeros_like(acc_ref)

    # Join source & target tiles along rows inside VMEM (cheap sublane concat; replaces
    # the former host-side HBM round trip).
    f = jnp.concatenate([fs_ref[...], ft_ref[...]], axis=0).astype(jnp.float32)   # (2T, F)
    g = jnp.concatenate([gs_ref[...], gt_ref[...]], axis=0).astype(jnp.float32)   # (2T, C)

    # softmax over classes (detached in torch; f32 on VPU/EUP).
    g_max = jnp.max(g, axis=1, keepdims=True)
    g_exp = jnp.exp(g - g_max)
    p = g_exp / jnp.sum(g_exp, axis=1, keepdims=True)                             # (2T, C)

    # MultiLinearMap fused with Linear-1: h[:, c*F:(c+1)*F] = p[:, c] * f built with C
    # VPU broadcast-muls + one lane concat, then ONE MXU matmul with K = C*F.
    h = jnp.concatenate([p[:, c:c + 1] * f for c in range(n_cls)], axis=1)        # (2T, C*F)

    z1 = jnp.dot(h.astype(mm_dtype), w1_ref[...],
                 preferred_element_type=jnp.float32) + b1_ref[...]
    a1 = jnp.maximum(z1, 0.0)
    z2 = jnp.dot(a1.astype(mm_dtype), w2_ref[...],
                 preferred_element_type=jnp.float32) + b2_ref[...]
    a2 = jnp.maximum(z2, 0.0)
    # Final layer has a single output column: VPU broadcast-mul + lane reduction
    # (keeps the 1-wide result off the MXU result path / masked stores).
    z3 = jnp.sum(a2 * w3_ref[...], axis=1, keepdims=True) + b3_ref[...]           # (2T, 1)
    d = jax.nn.sigmoid(z3)

    # Domain labels + valid-row mask, synthesized in-kernel (no label DMA).
    rows = jax.lax.broadcasted_iota(jnp.int32, (2 * tile_b, 1), 0)
    is_source = rows < tile_b
    y = jnp.where(is_source, 1.0 - eps, eps).astype(jnp.float32)                  # (2T, 1)
    local = jnp.where(is_source, rows, rows - tile_b)
    valid = (pid * tile_b + local) < batch_per_domain

    # Binary cross entropy with PyTorch's log clamp at -100 (reduction='mean').
    log_d = jnp.maximum(jnp.log(d), -100.0)
    log_1md = jnp.maximum(jnp.log(1.0 - d), -100.0)
    per_example = -(y * log_d + (1.0 - y) * log_1md)
    per_example = jnp.where(valid, per_example, 0.0)

    # binary_accuracy (percent) on the same predictions.
    pred = (d >= 0.5).astype(jnp.float32)
    tgt = (y > 0.5).astype(jnp.float32)
    correct = jnp.where(valid, (pred == tgt).astype(jnp.float32), 0.0)

    loss_ref[...] += jnp.sum(per_example, axis=0, keepdims=True)
    acc_ref[...] += jnp.sum(correct, axis=0, keepdims=True)

    @pl.when(pid == pl.num_programs(0) - 1)
    def _finalize():
        n_total = 2.0 * batch_per_domain
        loss_ref[...] = loss_ref[...] * (1.0 / n_total)
        acc_ref[...] = acc_ref[...] * (100.0 / n_total)


def cdan_loss(g_s, f_s, g_t, f_t, params, *, eps=0.0, tile_b=None,
              mm_dtype=jnp.bfloat16):
    """Fused CDAN loss. Returns (loss, domain_discriminator_accuracy_percent)."""
    # TODO(synk): unequal source/target batch sizes would need per-domain ragged masking;
    # standard CDAN training uses equal minibatches, which is what we support here.
    assert f_s.shape[0] == f_t.shape[0] and g_s.shape[0] == g_t.shape[0]
    batch, feat_dim = f_s.shape
    n_cls = g_s.shape[1]
    hidden = params["W1"].shape[1]
    assert params["W1"].shape[0] == n_cls * feat_dim

    if tile_b is None:
        tile_b = batch if batch <= 256 else 256
    if tile_b != batch and tile_b % 8 != 0:   # block rows: sublane-aligned or full batch
        tile_b = batch
    grid = (pl.cdiv(batch, tile_b),)

    f32 = jnp.float32
    fs, ft = f_s.astype(f32), f_t.astype(f32)
    gs, gt = g_s.astype(f32), g_t.astype(f32)
    w1 = params["W1"].astype(mm_dtype)                       # (C*F, H), rows ordered c*F + j
    w2 = params["W2"].astype(mm_dtype)                       # (H, H)
    b1 = params["b1"].reshape(1, hidden).astype(f32)
    b2 = params["b2"].reshape(1, hidden).astype(f32)
    w3_row = params["W3"].astype(f32).reshape(1, hidden)     # (H,1) -> (1,H) for the VPU path
    b3 = params["b3"].reshape(1, 1).astype(f32)

    kernel = functools.partial(
        _cdan_kernel, n_cls=n_cls, tile_b=tile_b, batch_per_domain=batch,
        eps=float(eps), mm_dtype=mm_dtype)

    n_total = 2 * batch
    itemsize = jnp.dtype(mm_dtype).itemsize
    cost = pl.CostEstimate(
        flops=int(2 * n_total * (n_cls * feat_dim) * hidden
                  + 2 * n_total * hidden * hidden
                  + 2 * n_total * hidden
                  + 2 * n_total * n_cls * feat_dim),
        transcendentals=int(n_total * (n_cls + 3)),
        bytes_accessed=int(4 * (fs.size + ft.size + gs.size + gt.size)
                           + itemsize * (w1.size + w2.size)
                           + 4 * (b1.size + b2.size + w3_row.size + b3.size) + 8),
    )

    loss, acc = pl.pallas_call(
        kernel,
        out_shape=(jax.ShapeDtypeStruct((1, 1), f32),
                   jax.ShapeDtypeStruct((1, 1), f32)),
        grid=grid,
        in_specs=[
            pl.BlockSpec((tile_b, feat_dim), lambda i: (i, 0)),           # f_s tile
            pl.BlockSpec((tile_b, n_cls), lambda i: (i, 0)),              # g_s tile
            pl.BlockSpec((tile_b, feat_dim), lambda i: (i, 0)),           # f_t tile
            pl.BlockSpec((tile_b, n_cls), lambda i: (i, 0)),              # g_t tile
            # TODO(synk): at real CDAN sizes (C=31, F=2048, H=1024) W1 must be K-tiled via a
            # reduction grid axis + f32 accumulator scratch to fit v7x's 64 MiB VMEM.
            pl.BlockSpec((n_cls * feat_dim, hidden), lambda i: (0, 0)),   # W1 (resident)
            pl.BlockSpec((1, hidden), lambda i: (0, 0)),                  # b1
            pl.BlockSpec((hidden, hidden), lambda i: (0, 0)),             # W2
            pl.BlockSpec((1, hidden), lambda i: (0, 0)),                  # b2
            pl.BlockSpec((1, hidden), lambda i: (0, 0)),                  # W3 row
            pl.BlockSpec((1, 1), lambda i: (0, 0)),                       # b3
        ],
        out_specs=(pl.BlockSpec((1, 1), lambda i: (0, 0)),
                   pl.BlockSpec((1, 1), lambda i: (0, 0))),
        compiler_params=pltpu.CompilerParams(
            dimension_semantics=("arbitrary",)),   # batch axis reduces into the outputs
        cost_estimate=cost,
    )(fs, gs, ft, gt, w1, b1, w2, b2, w3_row, b3)
    return loss[0, 0], acc[0, 0]


def _reference(g_s, f_s, g_t, f_t, params, eps=0.0):
    """Plain-JAX reference mirroring the PyTorch forward (loss, accuracy%, d)."""
    f = jnp.concatenate([f_s, f_t], 0)
    g = jax.nn.softmax(jnp.concatenate([g_s, g_t], 0), axis=1)
    n = f.shape[0]
    h = (g[:, :, None] * f[:, None, :]).reshape(n, -1)        # MultiLinearMap
    a1 = jnp.maximum(h @ params["W1"] + params["b1"], 0.0)
    a2 = jnp.maximum(a1 @ params["W2"] + params["b2"], 0.0)
    d = jax.nn.sigmoid(a2 @ params["W3"] + params["b3"])
    y = jnp.concatenate([jnp.full((g_s.shape[0], 1), 1.0 - eps),
                         jnp.full((g_t.shape[0], 1), eps)], 0)
    per = -(y * jnp.maximum(jnp.log(d), -100.0)
            + (1 - y) * jnp.maximum(jnp.log(1 - d), -100.0))
    loss = jnp.mean(per)
    acc = jnp.mean(((d >= 0.5) == (y > 0.5)).astype(jnp.float32)) * 100.0
    return loss, acc, d


if __name__ == "__main__":
    # Small shapes consistent with the module's forward (docstring example scaled down):
    # per-domain batch = 10, feature dim F = 128, classes C = 4, discriminator hidden = 64,
    # discriminator input = F*C = 512.
    B, F_DIM, C, HID = 10, 128, 4, 64

    key = jax.random.PRNGKey(0)
    ks = jax.random.split(key, 8)
    f_s = jax.random.normal(ks[0], (B, F_DIM), jnp.float32)
    f_t = jax.random.normal(ks[1], (B, F_DIM), jnp.float32)
    g_s = jax.random.normal(ks[2], (B, C), jnp.float32)
    g_t = jax.random.normal(ks[3], (B, C), jnp.float32)

    params = {
        "W1": jax.random.normal(ks[4], (F_DIM * C, HID), jnp.float32) / math.sqrt(F_DIM * C),
        "b1": jnp.zeros((1, HID), jnp.float32),
        "W2": jax.random.normal(ks[5], (HID, HID), jnp.float32) / math.sqrt(HID),
        "b2": jnp.zeros((1, HID), jnp.float32),
        "W3": jax.random.normal(ks[6], (HID, 1), jnp.float32) / math.sqrt(HID),
        "b3": jnp.zeros((1, 1), jnp.float32),
    }

    ref_loss, ref_acc, ref_d = _reference(g_s, f_s, g_t, f_t, params)

    # f32-MXU run with an explicit multi-tile grid (tile_b=8 over B=10) to exercise the
    # accumulator path and the masked, padded last tile. Tight numeric check.
    loss32, acc32 = cdan_loss(g_s, f_s, g_t, f_t, params,
                              tile_b=8, mm_dtype=jnp.float32)
    jax.block_until_ready((loss32, acc32))
    assert jnp.allclose(loss32, ref_loss, atol=1e-3, rtol=1e-3), (loss32, ref_loss)

    # Fast path: bf16 MXU inputs with f32 accumulation (default config). Looser check.
    loss16, acc16 = cdan_loss(g_s, f_s, g_t, f_t, params)
    jax.block_until_ready((loss16, acc16))
    assert jnp.allclose(loss16, ref_loss, atol=3e-2, rtol=3e-2), (loss16, ref_loss)

    # Accuracy checks (skipped only if a prediction sits within numeric noise of 0.5).
    assert 0.0 <= float(acc32) <= 100.0 and 0.0 <= float(acc16) <= 100.0
    margin = float(jnp.min(jnp.abs(ref_d - 0.5)))
    if margin > 1e-3:
        assert abs(float(acc32) - float(ref_acc)) < 1e-3, (acc32, ref_acc)
    if margin > 5e-2:
        assert abs(float(acc16) - float(ref_acc)) < 1e-3, (acc16, ref_acc)

    print("KERNEL_OK")
</pallas_src>

<mosaic_0001>
module attributes {stable_mosaic.version = 11 : i64} {
  func.func @_cdan_kernel(%arg0: i32, %arg1: memref<8x128xf32, #tpu.memory_space<vmem>>, %arg2: memref<8x4xf32, #tpu.memory_space<vmem>>, %arg3: memref<8x128xf32, #tpu.memory_space<vmem>>, %arg4: memref<8x4xf32, #tpu.memory_space<vmem>>, %arg5: memref<512x64xf32, #tpu.memory_space<vmem>>, %arg6: memref<1x64xf32, #tpu.memory_space<vmem>>, %arg7: memref<64x64xf32, #tpu.memory_space<vmem>>, %arg8: memref<1x64xf32, #tpu.memory_space<vmem>>, %arg9: memref<1x64xf32, #tpu.memory_space<vmem>>, %arg10: memref<1x1xf32, #tpu.memory_space<vmem>>, %arg11: memref<1x1xf32, #tpu.memory_space<vmem>>, %arg12: memref<1x1xf32, #tpu.memory_space<vmem>>) attributes {dimension_semantics = [#tpu.dimension_semantics<arbitrary>], iteration_bounds = array<i64: 2>, scalar_prefetch = 0 : i64, scratch_operands = 0 : i64, tpu.core_type = #tpu.core_type<tc>, window_params = [{transform_indices = @transform_0, window_bounds = array<i64: 8, 128>}, {transform_indices = @transform_1, window_bounds = array<i64: 8, 4>}, {transform_indices = @transform_2, window_bounds = array<i64: 8, 128>}, {transform_indices = @transform_3, window_bounds = array<i64: 8, 4>}, {pipeline_mode = #tpu.pipeline_mode<synchronous>, transform_indices = @transform_4, window_bounds = array<i64: 512, 64>}, {pipeline_mode = #tpu.pipeline_mode<synchronous>, transform_indices = @transform_5, window_bounds = array<i64: 1, 64>}, {pipeline_mode = #tpu.pipeline_mode<synchronous>, transform_indices = @transform_6, window_bounds = array<i64: 64, 64>}, {pipeline_mode = #tpu.pipeline_mode<synchronous>, transform_indices = @transform_7, window_bounds = array<i64: 1, 64>}, {pipeline_mode = #tpu.pipeline_mode<synchronous>, transform_indices = @transform_8, window_bounds = array<i64: 1, 64>}, {pipeline_mode = #tpu.pipeline_mode<synchronous>, transform_indices = @transform_9, window_bounds = array<i64: 1, 1>}, {pipeline_mode = #tpu.pipeline_mode<synchronous>, transform_indices = @transform_10, window_bounds = array<i64: 1, 1>}, {pipeline_mode = #tpu.pipeline_mode<synchronous>, transform_indices = @transform_11, window_bounds = array<i64: 1, 1>}]} {
    %c0_i32 = arith.constant 0 : i32
    %0 = arith.cmpi eq, %arg0, %c0_i32 : i32
    %1 = arith.extui %0 : i1 to i32
    %c0_i32_0 = arith.constant 0 : i32
    %2 = arith.cmpi ne, %1, %c0_i32_0 : i32
    scf.if %2 {
      %cst_51 = arith.constant 0.000000e+00 : f32
      %115 = vector.broadcast %cst_51 : f32 to vector<1x1xf32>
      %c0_52 = arith.constant 0 : index
      %c0_53 = arith.constant 0 : index
      %116 = vector.load %arg11[%c0_52, %c0_53] : memref<1x1xf32, #tpu.memory_space<vmem>>, vector<1x1xf32>
      tpu.vector_store %arg11[%c0_52, %c0_53], %115 {strides = array<i32>} : memref<1x1xf32, #tpu.memory_space<vmem>>, vector<1x1xf32>,
      %cst_54 = arith.constant 0.000000e+00 : f32
      %117 = vector.broadcast %cst_54 : f32 to vector<1x1xf32>
      %c0_55 = arith.constant 0 : index
      %c0_56 = arith.constant 0 : index
      %118 = vector.load %arg12[%c0_55, %c0_56] : memref<1x1xf32, #tpu.memory_space<vmem>>, vector<1x1xf32>
      tpu.vector_store %arg12[%c0_55, %c0_56], %117 {strides = array<i32>} : memref<1x1xf32, #tpu.memory_space<vmem>>, vector<1x1xf32>,
    } else {
    }
    %c0 = arith.constant 0 : index
    %c0_1 = arith.constant 0 : index
    %3 = vector.load %arg1[%c0, %c0_1] : memref<8x128xf32, #tpu.memory_space<vmem>>, vector<8x128xf32>
    %c0_2 = arith.constant 0 : index
    %c0_3 = arith.constant 0 : index
    %4 = vector.load %arg3[%c0_2, %c0_3] : memref<8x128xf32, #tpu.memory_space<vmem>>, vector<8x128xf32>
    %5 = tpu.concatenate %3, %4 in 0 : vector<8x128xf32>, vector<8x128xf32> -> vector<16x128xf32>
    %c0_4 = arith.constant 0 : index
    %c0_5 = arith.constant 0 : index
    %6 = vector.load %arg2[%c0_4, %c0_5] : memref<8x4xf32, #tpu.memory_space<vmem>>, vector<8x4xf32>
    %c0_6 = arith.constant 0 : index
    %c0_7 = arith.constant 0 : index
    %7 = vector.load %arg4[%c0_6, %c0_7] : memref<8x4xf32, #tpu.memory_space<vmem>>, vector<8x4xf32>
    %8 = tpu.concatenate %6, %7 in 0 : vector<8x4xf32>, vector<8x4xf32> -> vector<16x4xf32>
    %cst = arith.constant dense<0xFF800000> : vector<16xf32>
    %9 = vector.multi_reduction <maximumf>, %8, %cst [1] : vector<16x4xf32> to vector<16xf32>
    %10 = vector.shape_cast %9 : vector<16xf32> to vector<16x1xf32>
    %11 = vector.broadcast %10 : vector<16x1xf32> to vector<16x4xf32>
    %12 = arith.subf %8, %11 : vector<16x4xf32>
    %13 = math.exp %12 : vector<16x4xf32>
    %cst_8 = arith.constant dense<0.000000e+00> : vector<16xf32>
    %14 = vector.multi_reduction <add>, %13, %cst_8 [1] : vector<16x4xf32> to vector<16xf32>
    %15 = vector.shape_cast %14 : vector<16xf32> to vector<16x1xf32>
    %16 = vector.broadcast %15 : vector<16x1xf32> to vector<16x4xf32>
    %17 = arith.divf %13, %16 : vector<16x4xf32>
    %18 = vector.extract_strided_slice %17 {offsets = [0, 0], sizes = [16, 1], strides = [1, 1]} : vector<16x4xf32> to vector<16x1xf32>
    %19 = vector.broadcast %18 : vector<16x1xf32> to vector<16x128xf32>
    %20 = arith.mulf %19, %5 : vector<16x128xf32>
    %21 = vector.extract_strided_slice %17 {offsets = [0, 1], sizes = [16, 1], strides = [1, 1]} : vector<16x4xf32> to vector<16x1xf32>
    %22 = vector.broadcast %21 : vector<16x1xf32> to vector<16x128xf32>
    %23 = arith.mulf %22, %5 : vector<16x128xf32>
    %24 = vector.extract_strided_slice %17 {offsets = [0, 2], sizes = [16, 1], strides = [1, 1]} : vector<16x4xf32> to vector<16x1xf32>
    %25 = vector.broadcast %24 : vector<16x1xf32> to vector<16x128xf32>
    %26 = arith.mulf %25, %5 : vector<16x128xf32>
    %27 = vector.extract_strided_slice %17 {offsets = [0, 3], sizes = [16, 1], strides = [1, 1]} : vector<16x4xf32> to vector<16x1xf32>
    %28 = vector.broadcast %27 : vector<16x1xf32> to vector<16x128xf32>
    %29 = arith.mulf %28, %5 : vector<16x128xf32>
    %30 = tpu.concatenate %20, %23, %26, %29 in 1 : vector<16x128xf32>, vector<16x128xf32>, vector<16x128xf32>, vector<16x128xf32> -> vector<16x512xf32>
    %c0_9 = arith.constant 0 : index
    %c0_10 = arith.constant 0 : index
    %31 = vector.load %arg5[%c0_9, %c0_10] : memref<512x64xf32, #tpu.memory_space<vmem>>, vector<512x64xf32>
    %cst_11 = arith.constant dense<0.000000e+00> : vector<16x64xf32>
    %32 = tpu.matmul %30, %31, %cst_11 {dimension_numbers = #tpu.dot_dimension_numbers<[1], [0], [0], [1], [0, 0, 1, 1], [], []>} : vector<16x512xf32>, vector<512x64xf32>, vector<16x64xf32> -> vector<16x64xf32>
    %c0_12 = arith.constant 0 : index
    %c0_13 = arith.constant 0 : index
    %33 = vector.load %arg6[%c0_12, %c0_13] : memref<1x64xf32, #tpu.memory_space<vmem>>, vector<1x64xf32>
    %34 = vector.broadcast %33 : vector<1x64xf32> to vector<16x64xf32>
    %35 = arith.addf %32, %34 : vector<16x64xf32>
    %cst_14 = arith.constant 0.000000e+00 : f32
    %36 = vector.broadcast %cst_14 : f32 to vector<16x64xf32>
    %37 = arith.maximumf %35, %36 : vector<16x64xf32>
    %c0_15 = arith.constant 0 : index
    %c0_16 = arith.constant 0 : index
    %38 = vector.load %arg7[%c0_15, %c0_16] : memref<64x64xf32, #tpu.memory_space<vmem>>, vector<64x64xf32>
    %cst_17 = arith.constant dense<0.000000e+00> : vector<16x64xf32>
    %39 = tpu.matmul %37, %38, %cst_17 {dimension_numbers = #tpu.dot_dimension_numbers<[1], [0], [0], [1], [0, 0, 1, 1], [], []>} : vector<16x64xf32>, vector<64x64xf32>, vector<16x64xf32> -> vector<16x64xf32>
    %c0_18 = arith.constant 0 : index
    %c0_19 = arith.constant 0 : index
    %40 = vector.load %arg8[%c0_18, %c0_19] : memref<1x64xf32, #tpu.memory_space<vmem>>, vector<1x64xf32>
    %41 = vector.broadcast %40 : vector<1x64xf32> to vector<16x64xf32>
    %42 = arith.addf %39, %41 : vector<16x64xf32>
    %cst_20 = arith.constant 0.000000e+00 : f32
    %43 = vector.broadcast %cst_20 : f32 to vector<16x64xf32>
    %44 = arith.maximumf %42, %43 : vector<16x64xf32>
    %c0_21 = arith.constant 0 : index
    %c0_22 = arith.constant 0 : index
    %45 = vector.load %arg9[%c0_21, %c0_22] : memref<1x64xf32, #tpu.memory_space<vmem>>, vector<1x64xf32>
    %46 = vector.broadcast %45 : vector<1x64xf32> to vector<16x64xf32>
    %47 = arith.mulf %44, %46 : vector<16x64xf32>
    %cst_23 = arith.constant dense<0.000000e+00> : vector<16xf32>
    %48 = vector.multi_reduction <add>, %47, %cst_23 [1] : vector<16x64xf32> to vector<16xf32>
    %49 = vector.shape_cast %48 : vector<16xf32> to vector<16x1xf32>
    %c0_24 = arith.constant 0 : index
    %c0_25 = arith.constant 0 : index
    %50 = vector.load %arg10[%c0_24, %c0_25] : memref<1x1xf32, #tpu.memory_space<vmem>>, vector<1x1xf32>
    %51 = vector.broadcast %50 : vector<1x1xf32> to vector<16x1xf32>
    %52 = arith.addf %49, %51 : vector<16x1xf32>
    %53 = arith.negf %52 : vector<16x1xf32>
    %54 = math.exp %53 : vector<16x1xf32>
    %cst_26 = arith.constant 1.000000e+00 : f32
    %55 = vector.broadcast %cst_26 : f32 to vector<16x1xf32>
    %56 = arith.addf %55, %54 : vector<16x1xf32>
    %57 = arith.divf %55, %56 : vector<16x1xf32>
    %58 = tpu.iota {dimensions = array<i32: 0>} : vector<16x1xi32>
    %c8_i32 = arith.constant 8 : i32
    %59 = vector.broadcast %c8_i32 : i32 to vector<16x1xi32>
    %60 = arith.cmpi slt, %58, %59 : vector<16x1xi32>
    %cst_27 = arith.constant 1.000000e+00 : f32
    %cst_28 = arith.constant 0.000000e+00 : f32
    %61 = vector.broadcast %cst_27 : f32 to vector<16x1xf32>
    %62 = vector.broadcast %cst_28 : f32 to vector<16x1xf32>
    %63 = arith.select %60, %61, %62 : vector<16x1xi1>, vector<16x1xf32>
    %c8_i32_29 = arith.constant 8 : i32
    %64 = vector.broadcast %c8_i32_29 : i32 to vector<16x1xi32>
    %65 = arith.subi %58, %64 : vector<16x1xi32>
    %66 = arith.select %60, %58, %65 : vector<16x1xi1>, vector<16x1xi32>
    %c8_i32_30 = arith.constant 8 : i32
    %67 = arith.muli %arg0, %c8_i32_30 : i32
    %68 = vector.broadcast %67 : i32 to vector<16x1xi32>
    %69 = arith.addi %68, %66 : vector<16x1xi32>
    %c10_i32 = arith.constant 10 : i32
    %70 = vector.broadcast %c10_i32 : i32 to vector<16x1xi32>
    %71 = arith.cmpi slt, %69, %70 : vector<16x1xi32>
    %72 = math.log %57 : vector<16x1xf32>
    %cst_31 = arith.constant -1.000000e+02 : f32
    %73 = vector.broadcast %cst_31 : f32 to vector<16x1xf32>
    %74 = arith.maximumf %72, %73 : vector<16x1xf32>
    %cst_32 = arith.constant 1.000000e+00 : f32
    %75 = vector.broadcast %cst_32 : f32 to vector<16x1xf32>
    %76 = arith.subf %75, %57 : vector<16x1xf32>
    %77 = math.log %76 : vector<16x1xf32>
    %cst_33 = arith.constant -1.000000e+02 : f32
    %78 = vector.broadcast %cst_33 : f32 to vector<16x1xf32>
    %79 = arith.maximumf %77, %78 : vector<16x1xf32>
    %80 = arith.mulf %63, %74 : vector<16x1xf32>
    %cst_34 = arith.constant 1.000000e+00 : f32
    %81 = vector.broadcast %cst_34 : f32 to vector<16x1xf32>
    %82 = arith.subf %81, %63 : vector<16x1xf32>
    %83 = arith.mulf %82, %79 : vector<16x1xf32>
    %84 = arith.addf %80, %83 : vector<16x1xf32>
    %cst_35 = arith.constant 0.000000e+00 : f32
    %85 = vector.broadcast %cst_35 : f32 to vector<16x1xf32>
    %86 = arith.subf %85, %84 : vector<16x1xf32>
    %cst_36 = arith.constant 0.000000e+00 : f32
    %87 = vector.broadcast %cst_36 : f32 to vector<16x1xf32>
    %88 = arith.select %71, %86, %87 : vector<16x1xi1>, vector<16x1xf32>
    %cst_37 = arith.constant 5.000000e-01 : f32
    %89 = vector.broadcast %cst_37 : f32 to vector<16x1xf32>
    %90 = arith.cmpf oge, %57, %89 : vector<16x1xf32>
    %91 = arith.extui %90 : vector<16x1xi1> to vector<16x1xi32>
    %92 = arith.sitofp %91 : vector<16x1xi32> to vector<16x1xf32>
    %cst_38 = arith.constant 5.000000e-01 : f32
    %93 = vector.broadcast %cst_38 : f32 to vector<16x1xf32>
    %94 = arith.cmpf ogt, %63, %93 : vector<16x1xf32>
    %95 = arith.extui %94 : vector<16x1xi1> to vector<16x1xi32>
    %96 = arith.sitofp %95 : vector<16x1xi32> to vector<16x1xf32>
    %97 = arith.cmpf oeq, %92, %96 : vector<16x1xf32>
    %98 = arith.extui %97 : vector<16x1xi1> to vector<16x1xi32>
    %99 = arith.sitofp %98 : vector<16x1xi32> to vector<16x1xf32>
    %cst_39 = arith.constant 0.000000e+00 : f32
    %100 = vector.broadcast %cst_39 : f32 to vector<16x1xf32>
    %101 = arith.select %71, %99, %100 : vector<16x1xi1>, vector<16x1xf32>
    %c0_40 = arith.constant 0 : index
    %c0_41 = arith.constant 0 : index
    %102 = vector.load %arg11[%c0_40, %c0_41] : memref<1x1xf32, #tpu.memory_space<vmem>>, vector<1x1xf32>
    %cst_42 = arith.constant dense<0.000000e+00> : vector<1xf32>
    %103 = vector.multi_reduction <add>, %88, %cst_42 [0] : vector<16x1xf32> to vector<1xf32>
    %104 = vector.shape_cast %103 : vector<1xf32> to vector<1x1xf32>
    %105 = arith.addf %102, %104 : vector<1x1xf32>
    %c0_43 = arith.constant 0 : index
    %c0_44 = arith.constant 0 : index
    %106 = vector.load %arg11[%c0_43, %c0_44] : memref<1x1xf32, #tpu.memory_space<vmem>>, vector<1x1xf32>
    tpu.vector_store %arg11[%c0_43, %c0_44], %105 {strides = array<i32>} : memref<1x1xf32, #tpu.memory_space<vmem>>, vector<1x1xf32>,
    %c0_45 = arith.constant 0 : index
    %c0_46 = arith.constant 0 : index
    %107 = vector.load %arg12[%c0_45, %c0_46] : memref<1x1xf32, #tpu.memory_space<vmem>>, vector<1x1xf32>
    %cst_47 = arith.constant dense<0.000000e+00> : vector<1xf32>
    %108 = vector.multi_reduction <add>, %101, %cst_47 [0] : vector<16x1xf32> to vector<1xf32>
    %109 = vector.shape_cast %108 : vector<1xf32> to vector<1x1xf32>
    %110 = arith.addf %107, %109 : vector<1x1xf32>
    %c0_48 = arith.constant 0 : index
    %c0_49 = arith.constant 0 : index
    %111 = vector.load %arg12[%c0_48, %c0_49] : memref<1x1xf32, #tpu.memory_space<vmem>>, vector<1x1xf32>
    tpu.vector_store %arg12[%c0_48, %c0_49], %110 {strides = array<i32>} : memref<1x1xf32, #tpu.memory_space<vmem>>, vector<1x1xf32>,
    %c1_i32 = arith.constant 1 : i32
    %112 = arith.cmpi eq, %arg0, %c1_i32 : i32
    %113 = arith.extui %112 : i1 to i32
    %c0_i32_50 = arith.constant 0 : i32
    %114 = arith.cmpi ne, %113, %c0_i32_50 : i32
    scf.if %114 {
      %c0_51 = arith.constant 0 : index
      %c0_52 = arith.constant 0 : index
      %115 = vector.load %arg11[%c0_51, %c0_52] : memref<1x1xf32, #tpu.memory_space<vmem>>, vector<1x1xf32>
      %cst_53 = arith.constant 5.000000e-02 : f32
      %116 = vector.broadcast %cst_53 : f32 to vector<1x1xf32>
      %117 = arith.mulf %115, %116 : vector<1x1xf32>
      %c0_54 = arith.constant 0 : index
      %c0_55 = arith.constant 0 : index
      %118 = vector.load %arg11[%c0_54, %c0_55] : memref<1x1xf32, #tpu.memory_space<vmem>>, vector<1x1xf32>
      tpu.vector_store %arg11[%c0_54, %c0_55], %117 {strides = array<i32>} : memref<1x1xf32, #tpu.memory_space<vmem>>, vector<1x1xf32>,
      %c0_56 = arith.constant 0 : index
      %c0_57 = arith.constant 0 : index
      %119 = vector.load %arg12[%c0_56, %c0_57] : memref<1x1xf32, #tpu.memory_space<vmem>>, vector<1x1xf32>
      %cst_58 = arith.constant 5.000000e+00 : f32
      %120 = vector.broadcast %cst_58 : f32 to vector<1x1xf32>
      %121 = arith.mulf %119, %120 : vector<1x1xf32>
      %c0_59 = arith.constant 0 : index
      %c0_60 = arith.constant 0 : index
      %122 = vector.load %arg12[%c0_59, %c0_60] : memref<1x1xf32, #tpu.memory_space<vmem>>, vector<1x1xf32>
      tpu.vector_store %arg12[%c0_59, %c0_60], %121 {strides = array<i32>} : memref<1x1xf32, #tpu.memory_space<vmem>>, vector<1x1xf32>,
    } else {
    }
    return
  }
  func.func @transform_0(%arg0: i32) -> (i32, i32) {
    %c0_i32 = arith.constant 0 : i32
    %c0_i32_0 = arith.constant 0 : i32
    return %arg0, %c0_i32 : i32, i32
  }
  func.func @transform_1(%arg0: i32) -> (i32, i32) {
    %c0_i32 = arith.constant 0 : i32
    %c0_i32_0 = arith.constant 0 : i32
    return %arg0, %c0_i32 : i32, i32
  }
  func.func @transform_2(%arg0: i32) -> (i32, i32) {
    %c0_i32 = arith.constant 0 : i32
    %c0_i32_0 = arith.constant 0 : i32
    return %arg0, %c0_i32 : i32, i32
  }
  func.func @transform_3(%arg0: i32) -> (i32, i32) {
    %c0_i32 = arith.constant 0 : i32
    %c0_i32_0 = arith.constant 0 : i32
    return %arg0, %c0_i32 : i32, i32
  }
  func.func @transform_4(%arg0: i32) -> (i32, i32) {
    %c0_i32 = arith.constant 0 : i32
    %c0_i32_0 = arith.constant 0 : i32
    %c0_i32_1 = arith.constant 0 : i32
    return %c0_i32, %c0_i32_0 : i32, i32
  }
  func.func @transform_5(%arg0: i32) -> (i32, i32) {
    %c0_i32 = arith.constant 0 : i32
    %c0_i32_0 = arith.constant 0 : i32
    %c0_i32_1 = arith.constant 0 : i32
    return %c0_i32, %c0_i32_0 : i32, i32
  }
  func.func @transform_6(%arg0: i32) -> (i32, i32) {
    %c0_i32 = arith.constant 0 : i32
    %c0_i32_0 = arith.constant 0 : i32
    %c0_i32_1 = arith.constant 0 : i32
    return %c0_i32, %c0_i32_0 : i32, i32
  }
  func.func @transform_7(%arg0: i32) -> (i32, i32) {
    %c0_i32 = arith.constant 0 : i32
    %c0_i32_0 = arith.constant 0 : i32
    %c0_i32_1 = arith.constant 0 : i32
    return %c0_i32, %c0_i32_0 : i32, i32
  }
  func.func @transform_8(%arg0: i32) -> (i32, i32) {
    %c0_i32 = arith.constant 0 : i32
    %c0_i32_0 = arith.constant 0 : i32
    %c0_i32_1 = arith.constant 0 : i32
    return %c0_i32, %c0_i32_0 : i32, i32
  }
  func.func @transform_9(%arg0: i32) -> (i32, i32) {
    %c0_i32 = arith.constant 0 : i32
    %c0_i32_0 = arith.constant 0 : i32
    %c0_i32_1 = arith.constant 0 : i32
    return %c0_i32, %c0_i32_0 : i32, i32
  }
  func.func @transform_10(%arg0: i32) -> (i32, i32) {
    %c0_i32 = arith.constant 0 : i32
    %c0_i32_0 = arith.constant 0 : i32
    %c0_i32_1 = arith.constant 0 : i32
    return %c0_i32, %c0_i32_0 : i32, i32
  }
  func.func @transform_11(%arg0: i32) -> (i32, i32) {
    %c0_i32 = arith.constant 0 : i32
    %c0_i32_0 = arith.constant 0 : i32
    %c0_i32_1 = arith.constant 0 : i32
    return %c0_i32, %c0_i32_0 : i32, i32
  }
}

</mosaic_0001>

<bundles_post_ra>
// kernel: tpu_custom_call.1
= control target key start
LH: loop header
LB: loop body
LE: loop exit
PB: predicated region body
PF: predicated region fallthrough
CT: control target
= control target key end

     0   :  { %s1715_s0 = inlined_call_operand.vmem [shape: f32[10,128], index: 0, kind: input, shape index: {}]   ;;  %s1716_s1 = inlined_call_operand.vmem [shape: f32[10,4], index: 1, kind: input, shape index: {}]   ;;  %s1717_s2 = inlined_call_operand.vmem [shape: f32[10,128], index: 2, kind: input, shape index: {}]   ;;  %s1718_s3 = inlined_call_operand.vmem [shape: f32[10,4], index: 3, kind: input, shape index: {}]   ;;  %s1719_s4 = inlined_call_operand.vmem [shape: f32[512,64], index: 4, kind: input, shape index: {}]   ;;  %s1720_s5 = inlined_call_operand.vmem [shape: f32[1,64], index: 5, kind: input, shape index: {}]   ;;  %s1721_s6 = inlined_call_operand.vmem [shape: f32[64,64], index: 6, kind: input, shape index: {}]   ;;  %s1722_s7 = inlined_call_operand.vmem [shape: f32[1,64], index: 7, kind: input, shape index: {}]   ;;  %s1723_s8 = inlined_call_operand.vmem [shape: f32[1,64], index: 8, kind: input, shape index: {}]   ;;  %s1724_s9 = inlined_call_operand.<no memory space> [shape: f32[1,1], index: 9, kind: input, shape index: {}]   ;;  %s1725_s10 = inlined_call_operand.hbm [shape: f32[1,1], index: 10, kind: output, shape index: {0}]   ;;  %s1726_s11 = inlined_call_operand.hbm [shape: f32[1,1], index: 11, kind: output, shape index: {1}]  }
   0x1   :  { %v17_v0 = vstv %s1724_s9 }
   0x2   :  { %18 = vst [vmem:[#allocation2] sm:$0x1] %v17_v0 }
   0x3   :  { %19 = vsyncpa [#allocation4], 0 }
   0x4   :  { %20 = vsyncpa [#allocation6], 0  ;;  %s1389_s19 = smov 0  }
   0x5 LB: > { %s1395_s20 = sadd.s32 4294967295, %s1316_s19   ;;  %p1061_p0 = scmp.ge.s32.totalorder %s1316_s19, 1  ;;  %s1316_s19 = sphi %s1389_s19, %s26_s19  }
   0x6   : > { %p360_p1 = scmp.lt.s32.totalorder %s1316_s19, 3 }
   0x8   : > { %p361_p2 = pnand %p1061_p0, %p360_p1 }
   0x9   : > { %p406_p3 = scmp.lt.s32.totalorder (!%p361_p2), %s1395_s20, 1  ;;  %p1066_p4 = scmp.ne.s32.totalorder (!%p361_p2), %s1395_s20, 0 }
   0xa   : > { %364 = sbr.rel (%p361_p2) target bundleno = 1150 (0x47e), region = 60 }
   0xf   : > { %s407_s9 = scalar_select %p406_p3, %s1395_s20, 1 }
  0x10   : > { %425 = sbr.rel (%p1066_p4) target bundleno = 23 (0x17), region = 64 }
  0x11   : > { %s1401_s21 = sshll.u32 %s407_s9, 3 }
  0x12   : > { %s409_s24 = scalar_lea.vmem %s1715_s0, %s1401_s21  ;;  %s413_s27 = scalar_lea.vmem %s1716_s1, %s1401_s21 }
  0x13   : > { %s417_s30 = scalar_lea.vmem %s1717_s2, %s1401_s21  ;;  %s421_s14 = scalar_lea.vmem %s1718_s3, %s1401_s21 }
  0x15   : > { %vm426_vm0 = vcmask 0   ;;  %v1318_v1 = vmov 0.0  }
  0x16   : > { %427 = vst.msk [vmem:[#allocation3] sm:$0x1] %vm426_vm0, %v1318_v1  ;;  %428 = vst.msk [vmem:[#allocation5] sm:$0x1] %vm426_vm0, %v1318_v1 }
  0x17 PF: > { %v431_v2 = vld [vmem:[%s413_s27] sm:$0xff]  ;;  %vm433_vm1 = vcmask 31744   ;;  %v1319_v16 = vmov 1   ;;  %v1320_v17 = vmov 0   ;;  %v529_v18 = vld [vmem:[%s1719_s4 + $0xf8] sm:$0xff]  ;;  %v528_v20 = vld [vmem:[%s1719_s4 + $0xf0] sm:$0xff] }
  0x18   : > { %v432_v3 = vld [vmem:[%s421_s14] sm:$0xff]  ;;  %v434_v4 = vsel %vm433_vm1, %v431_v2, -inf  ;;  %1221 = vset.pattern.permute.xlu0 %v1319_v16  ;;  %1222 = vset.pattern.permute.xlu1 %v1320_v17  ;;  %v513_v19 = vld [vmem:[%s1719_s4 + $0x78] sm:$0xff]  ;;  %v512_v21 = vld [vmem:[%s1719_s4 + $0x70] sm:$0xff]  ;;  %vm736_vm2 = vcmask 523264   ;;  %s1076_s13 = sshll.u32 %s1395_s20, 3 }
  0x19   : > { %435 = vmax.xlane.f32.xlu0 %v434_v4  ;;  %v437_v5 = vsel %vm433_vm1, %v432_v3, -inf  ;;  %1088 = vmatprep.subr.mxu0 %v529_v18  ;;  %v527_v22 = vld [vmem:[%s1719_s4 + $0xe8] sm:$0xff]  ;;  %v561_v24 = vld [vmem:[%s1719_s4 + $0x1f8] sm:$0xff]  ;;  %v526_v25 = vld [vmem:[%s1719_s4 + $0xe0] sm:$0xff]  ;;  %vm919_vm7 = vcmask 7168   ;;  %vm930_vm9 = vcmask 0  }
  0x1a   : > { %1089 = vmatpush3.msra.mxu0 %v513_v19  ;;  %v511_v23 = vld [vmem:[%s1719_s4 + $0x68] sm:$0xff]  ;;  %1126 = vmatprep.subr.mxu1 %v561_v24  ;;  %v545_v26 = vld [vmem:[%s1719_s4 + $0x178] sm:$0xff]  ;;  %v560_v27 = vld [vmem:[%s1719_s4 + $0x1f0] sm:$0xff]  ;;  %p1081_p5 = scmp.ne.s32.totalorder %s1395_s20, 1 }
  0x1b   : > { %1090 = vmatprep.subr.mxu0 %v528_v20  ;;  %v510_v28 = vld [vmem:[%s1719_s4 + $0x60] sm:$0xff]  ;;  %1127 = vmatpush3.msra.mxu1 %v545_v26  ;;  %v544_v29 = vld [vmem:[%s1719_s4 + $0x170] sm:$0xff]  ;;  %v525_v30 = vld [vmem:[%s1719_s4 + $0xd8] sm:$0xff]  ;;  %v1322_v26 = vmov 2  }
  0x1c   : > { %1091 = vmatpush3.msra.mxu0 %v512_v21  ;;  %1128 = vmatprep.subr.mxu1 %v560_v27  ;;  %v559_v31 = vld [vmem:[%s1719_s4 + $0x1e8] sm:$0xff]  ;;  %v509_v33 = vld [vmem:[%s1719_s4 + $0x58] sm:$0xff]  ;;  %v558_v34 = vld [vmem:[%s1719_s4 + $0x1e0] sm:$0xff] }
  0x1d   : > { %438 = vmax.xlane.f32.xlu0 %v437_v5  ;;  %1092 = vmatprep.subr.mxu0 %v527_v22  ;;  %v543_v32 = vld [vmem:[%s1719_s4 + $0x168] sm:$0xff]  ;;  %v524_v35 = vld [vmem:[%s1719_s4 + $0xd0] sm:$0xff]  ;;  %v542_v36 = vld [vmem:[%s1719_s4 + $0x160] sm:$0xff] }
  0x1e   : > { %1093 = vmatpush3.msra.mxu0 %v511_v23  ;;  %1129 = vmatpush3.msra.mxu1 %v544_v29  ;;  %v508_v37 = vld [vmem:[%s1719_s4 + $0x50] sm:$0xff]  ;;  %v557_v38 = vld [vmem:[%s1719_s4 + $0x1d8] sm:$0xff]  ;;  %v523_v39 = vld [vmem:[%s1719_s4 + $0xc8] sm:$0xff]  ;;  %v1321_v23 = vmov 3  }
  0x1f   : > { %1094 = vmatprep.subr.mxu0 %v526_v25  ;;  %1130 = vmatprep.subr.mxu1 %v559_v31  ;;  %v541_v40 = vld [vmem:[%s1719_s4 + $0x158] sm:$0xff]  ;;  %v507_v41 = vld [vmem:[%s1719_s4 + $0x48] sm:$0xff]  ;;  %v556_v42 = vld [vmem:[%s1719_s4 + $0x1d0] sm:$0xff] }
  0x20   : > { %1095 = vmatpush3.msra.mxu0 %v510_v28  ;;  %1131 = vmatpush3.msra.mxu1 %v543_v32  ;;  %v522_v43 = vld [vmem:[%s1719_s4 + $0xc0] sm:$0xff]  ;;  %v540_v44 = vld [vmem:[%s1719_s4 + $0x150] sm:$0xff]  ;;  %v555_v46 = vld [vmem:[%s1719_s4 + $0x1c8] sm:$0xff] }
  0x21   : > { %1096 = vmatprep.subr.mxu0 %v525_v30  ;;  %1132 = vmatprep.subr.mxu1 %v558_v34  ;;  %v506_v45 = vld [vmem:[%s1719_s4 + $0x40] sm:$0xff]  ;;  %v521_v47 = vld [vmem:[%s1719_s4 + $0xb8] sm:$0xff]  ;;  %v539_v48 = vld [vmem:[%s1719_s4 + $0x148] sm:$0xff] }
  0x22   : > { %1097 = vmatpush3.msra.mxu0 %v509_v33  ;;  %1133 = vmatpush3.msra.mxu1 %v542_v36  ;;  %v505_v49 = vld [vmem:[%s1719_s4 + $0x38] sm:$0xff]  ;;  %v554_v50 = vld [vmem:[%s1719_s4 + $0x1c0] sm:$0xff]  ;;  %v520_v51 = vld [vmem:[%s1719_s4 + $0xb0] sm:$0xff] }
  0x23   : > { %1098 = vmatprep.subr.mxu0 %v524_v35  ;;  %1134 = vmatprep.subr.mxu1 %v557_v38  ;;  %v538_v52 = vld [vmem:[%s1719_s4 + $0x140] sm:$0xff]  ;;  %v504_v53 = vld [vmem:[%s1719_s4 + $0x30] sm:$0xff]  ;;  %v553_v54 = vld [vmem:[%s1719_s4 + $0x1b8] sm:$0xff] }
  0x24   : > { %1099 = vmatpush3.msra.mxu0 %v508_v37  ;;  %1135 = vmatpush3.msra.mxu1 %v541_v40  ;;  %v519_v55 = vld [vmem:[%s1719_s4 + $0xa8] sm:$0xff]  ;;  %v537_v56 = vld [vmem:[%s1719_s4 + $0x138] sm:$0xff]  ;;  %v552_v58 = vld [vmem:[%s1719_s4 + $0x1b0] sm:$0xff] }
  0x25   : > { %1100 = vmatprep.subr.mxu0 %v523_v39  ;;  %1136 = vmatprep.subr.mxu1 %v556_v42  ;;  %v503_v57 = vld [vmem:[%s1719_s4 + $0x28] sm:$0xff]  ;;  %v518_v59 = vld [vmem:[%s1719_s4 + $0xa0] sm:$0xff]  ;;  %v536_v60 = vld [vmem:[%s1719_s4 + $0x130] sm:$0xff] }
  0x26   : > { %1101 = vmatpush3.msra.mxu0 %v507_v41  ;;  %1137 = vmatpush3.msra.mxu1 %v540_v44  ;;  %v502_v61 = vld [vmem:[%s1719_s4 + $0x20] sm:$0xff]  ;;  %v517_v62 = vld [vmem:[%s1719_s4 + $0x98] sm:$0xff]  ;;  %v516_v0 = vld [vmem:[%s1719_s4 + $0x90] sm:$0xff] }
  0x27   : > { %1102 = vmatprep.subr.mxu0 %v522_v43  ;;  %1138 = vmatprep.subr.mxu1 %v555_v46  ;;  %v501_v63 = vld [vmem:[%s1719_s4 + $0x18] sm:$0xff]  ;;  %v500_v1 = vld [vmem:[%s1719_s4 + $0x10] sm:$0xff]  ;;  %v499_v5 = vld [vmem:[%s1719_s4 + $0x8] sm:$0xff] }
  0x28   : > { %1103 = vmatpush3.msra.mxu0 %v506_v45  ;;  %1139 = vmatpush3.msra.mxu1 %v539_v48  ;;  %v549_v18 = vld [vmem:[%s1719_s4 + $0x198] sm:$0xff]  ;;  %v532_v20 = vld [vmem:[%s1719_s4 + $0x110] sm:$0xff]  ;;  %v547_v21 = vld [vmem:[%s1719_s4 + $0x188] sm:$0xff] }
  0x29   : > { %1104 = vmatprep.subr.mxu0 %v521_v47  ;;  %1140 = vmatprep.subr.mxu1 %v554_v50  ;;  %v533_v19 = vld [vmem:[%s1719_s4 + $0x118] sm:$0xff]  ;;  %v531_v22 = vld [vmem:[%s1719_s4 + $0x108] sm:$0xff]  ;;  %v546_v24 = vld [vmem:[%s1719_s4 + $0x180] sm:$0xff] }
  0x2a   : > { %1105 = vmatpush3.msra.mxu0 %v505_v49  ;;  %1141 = vmatpush3.msra.mxu1 %v538_v52  ;;  %v530_v25 = vld [vmem:[%s1719_s4 + $0x100] sm:$0xff]  ;;  %v728_v44 = vld [vmem:[%s1721_s6 + $0x38] sm:$0xff]  ;;  %v727_v45 = vld [vmem:[%s1721_s6 + $0x30] sm:$0xff] }
  0x2b   : > { %1106 = vmatprep.subr.mxu0 %v520_v51  ;;  %1142 = vmatprep.subr.mxu1 %v553_v54  ;;  %v429_v29 = vld [vmem:[%s409_s24] sm:$0xff]  ;;  %v726_v46 = vld [vmem:[%s1721_s6 + $0x28] sm:$0xff]  ;;  %v724_v48 = vld [vmem:[%s1721_s6 + $0x18] sm:$0xff] }
  0x2c   : > { %1107 = vmatpush3.msra.mxu0 %v504_v53  ;;  %1143 = vmatpush3.msra.mxu1 %v537_v56  ;;  %v430_v35 = vld [vmem:[%s417_s30] sm:$0xff]  ;;  %v723_v49 = vld [vmem:[%s1721_s6 + $0x10] sm:$0xff]  ;;  %v722_v50 = vld [vmem:[%s1721_s6 + $0x8] sm:$0xff] }
  0x2d   : > { %1108 = vmatprep.subr.mxu0 %v519_v55  ;;  %1144 = vmatprep.subr.mxu1 %v552_v58  ;;  %v725_v47 = vld [vmem:[%s1721_s6 + $0x20] sm:$0xff] }
  0x2e   : > { %1109 = vmatpush3.msra.mxu0 %v503_v57  ;;  %1145 = vmatpush3.msra.mxu1 %v536_v60  ;;  %v721_v51 = vld [vmem:[%s1721_s6] sm:$0xff] }
  0x2f   : > { %1110 = vmatprep.subr.mxu0 %v518_v59  ;;  %v1067_v55 = vld [vmem:[%s1720_s5] ss:$0 sm:$0xff] }
  0x30   : > { %1111 = vmatpush3.msra.mxu0 %v502_v61 }
  0x31   : > { %1112 = vmatprep.subr.mxu0 %v517_v62 }
  0x32   : > { %1113 = vmatpush3.msra.mxu0 %v501_v63 }
  0x33   : > { %1114 = vmatprep.subr.mxu0 %v516_v0 }
  0x34   : > { %1115 = vmatpush3.msra.mxu0 %v500_v1 }
  0xa2   : > { %v436_v6 = vpop.xlane.xlu0 %435 }
  0xa3   : > { %v440_v7 = vsub.f32 %v431_v2, %v436_v6  ;;  %v515_v2 = vld [vmem:[%s1719_s4 + $0x88] sm:$0xff] }
  0xa4   : > { %1116 = vmatprep.subr.mxu0 %v515_v2  ;;  %v551_v6 = vld [vmem:[%s1719_s4 + $0x1a8] sm:$0xff] }
  0xa5   : > { %v442_v8 = vmul.f32 1.442695, %v440_v7  ;;  %1117 = vmatpush3.msra.mxu0 %v499_v5  ;;  %1146 = vmatprep.subr.mxu1 %v551_v6  ;;  %v514_v7 = vld [vmem:[%s1719_s4 + $0x80] sm:$0xff] }
  0xa6   : > { %v439_v9 = vpop.xlane.xlu0 %438  ;;  %1118 = vmatprep.subr.mxu0 %v514_v7  ;;  %v1068_v7 = vld [vmem:[%s1722_s7] ss:$0 sm:$0xff] }
  0xa7   : > { %1230 = vpow2.f32 %v442_v8  ;;  %v441_v10 = vsub.f32 %v432_v3, %v439_v9  ;;  %v535_v8 = vld [vmem:[%s1719_s4 + $0x128] sm:$0xff]  ;;  %v498_v9 = vld [vmem:[%s1719_s4] sm:$0xff] }
  0xa8   : > { %1147 = vmatpush3.msra.mxu1 %v535_v8  ;;  %1119 = vmatpush3.msra.mxu0 %v498_v9 }
  0xa9   : > { %v444_v11 = vmul.f32 1.442695, %v441_v10  ;;  %1174 = vmatprep.subr.mxu0 %v728_v44 }
  0xab   : > { %1232 = vpow2.f32 %v444_v11  ;;  %v550_v11 = vld [vmem:[%s1719_s4 + $0x1a0] sm:$0xff] }
  0xac   : > { %1148 = vmatprep.subr.mxu1 %v550_v11  ;;  %v1071_v11 = vld [vmem:[%s1723_s8] ss:$0 sm:$0xff] }
  0xb4   : > { %v1422_v12 = vpop.eup %1230 }
  0xb5   : > { %v446_v13 = vsel %vm433_vm1, %v1422_v12, 0.0 }
  0xb6   : > { %447 = vadd.xlane.f32.xlu1 %v446_v13 }
  0xb8   : > { %v1426_v14 = vpop.eup %1232 }
  0xb9   : > { %v449_v15 = vsel %vm433_vm1, %v1426_v14, 0.0 }
  0xba   : > { %450 = vadd.xlane.f32.xlu1 %v449_v15  ;;  %v534_v15 = vld [vmem:[%s1719_s4 + $0x120] sm:$0xff] }
  0xbb   : > { %1149 = vmatpush3.msra.mxu1 %v534_v15 }
  0xbc   : > { %1150 = vmatprep.subr.mxu1 %v549_v18 }
  0xbd   : > { %1151 = vmatpush3.msra.mxu1 %v533_v19 }
 0x13f   : > { %v448_v3 = vpop.xlane.xlu1 %447 }
 0x140   : > { %1234 = vrcp.f32 %v448_v3 }
 0x143   : > { %v451_v4 = vpop.xlane.xlu1 %450 }
 0x144   : > { %1236 = vrcp.f32 %v451_v4 }
 0x14d   : > { %v1235_v10 = vpop.eup %1234 }
 0x14e   : > { %v453_v13 = vmul.f32 %v1235_v10, %v1422_v12  ;;  %v548_v12 = vld [vmem:[%s1719_s4 + $0x190] sm:$0xff] }
 0x14f   : > { %1152 = vmatprep.subr.mxu1 %v548_v12 }
 0x150   : > { %469 = vperm.xlu0 %1221, %v453_v13   ;;  %458 = vperm.xlu1 %1222, %v453_v13  }
 0x151   : > { %1153 = vmatpush3.msra.mxu1 %v532_v20  ;;  %v1237_v27 = vpop.eup %1236 }
 0x152   : > { %1154 = vmatprep.subr.mxu1 %v547_v21  ;;  %v455_v28 = vmul.f32 %v1237_v27, %v1426_v14 }
 0x153   : > { %1155 = vmatpush3.msra.mxu1 %v531_v22  ;;  %v1072_v22 = vld [vmem:[#allocation2] ss:$0 sm:$0xff] }
 0x154   : > { %1223 = vset.pattern.permute.xlu1 %v1321_v23  ;;  %1229 = vset.pattern.permute.xlu0 %v1321_v23 }
 0x155   : > { %489 = vperm.xlu1 %1223, %v453_v13   ;;  %1156 = vmatprep.subr.mxu1 %v546_v24 }
 0x156   : > { %1157 = vmatpush3.msra.mxu1 %v530_v25 }
 0x159   : > { %1224 = vset.pattern.permute.xlu1 %v1322_v26 }
 0x15a   : > { %479 = vperm.xlu1 %1224, %v453_v13  }
 0x15e   : > { %1225 = vset.pattern.permute.xlu1 %v1319_v16 }
 0x15f   : > { %473 = vperm.xlu1 %1225, %v455_v28  }
 0x163   : > { %1226 = vset.pattern.permute.xlu1 %v1320_v17 }
 0x164   : > { %463 = vperm.xlu1 %1226, %v455_v28  }
 0x168   : > { %1227 = vset.pattern.permute.xlu1 %v1321_v23 }
 0x169   : > { %493 = vperm.xlu1 %1227, %v455_v28  }
 0x16d   : > { %1228 = vset.pattern.permute.xlu1 %v1322_v26 }
 0x16e   : > { %483 = vperm.xlu1 %1228, %v455_v28  }
 0x1cb   : > { %v459_v30 = vpop.permute.xlu1 %458  ;;  %v470_v31 = vpop.permute.xlu0 %469 }
 0x1cc   : > { %v466_v32 = vmul.f32 %v459_v30, %v429_v29  ;;  %v476_v14 = vmul.f32 %v470_v31, %v429_v29 }
 0x1ce   : > { %633 = vmatprep.mubr.f32.mxu0 %v476_v14  ;;  %v856_v14 = vlaneseq }
 0x1cf   : > { %634 = vmatmul.mubr.f32.vlgmr.msra.gmra.mxu0 %v466_v32 }
 0x1d0   : > { %v490_v16 = vpop.permute.xlu1 %489  ;;  %1175 = vmatpush3.msra.mxu0 %v728_v44 }
 0x1d1   : > { %v496_v33 = vmul.f32 %v490_v16, %v429_v29  ;;  %1176 = vmatprep.subr.mxu0 %v727_v45  ;;  %v857_v16 = vshrl.u32 %v856_v14, 7 }
 0x1d2   : > { %1177 = vmatpush3.msra.mxu0 %v727_v45 }
 0x1d3   : > { %708 = vmatprep.mubr.f32.mxu1 %v496_v33  ;;  %1178 = vmatprep.subr.mxu0 %v726_v46  ;;  %v867_v33 = vstv %s1076_s13 }
 0x1d4   : > { %1179 = vmatpush3.msra.mxu0 %v726_v46 }
 0x1d5   : > { %v480_v17 = vpop.permute.xlu1 %479  ;;  %1180 = vmatprep.subr.mxu0 %v725_v47 }
 0x1d6   : > { %v486_v34 = vmul.f32 %v480_v17, %v429_v29  ;;  %1181 = vmatpush3.msra.mxu0 %v725_v47  ;;  %v868_v17 = vadd.s32 %v867_v33, %v857_v16 }
 0x1d7   : > { %1182 = vmatprep.subr.mxu0 %v724_v48 }
 0x1d8   : > { %709 = vmatmul.mubr.f32.vlgmr.msra.gmra.mxu1 %v486_v34  ;;  %1183 = vmatpush3.msra.mxu0 %v724_v48  ;;  %vm870_vm4 = vcmp.lt.s32.totalorder %v868_v17, 10 }
 0x1d9   : > { %1184 = vmatprep.subr.mxu0 %v723_v49 }
 0x1da   : > { %v474_v36 = vpop.permute.xlu1 %473  ;;  %1185 = vmatpush3.msra.mxu0 %v723_v49 }
 0x1db   : > { %v477_v37 = vmul.f32 %v474_v36, %v430_v35  ;;  %1186 = vmatprep.subr.mxu0 %v722_v50 }
 0x1dc   : > { %1187 = vmatpush3.msra.mxu0 %v722_v50 }
 0x1dd   : > { %638 = vmatprep.mubr.f32.mxu0 %v477_v37  ;;  %1188 = vmatprep.subr.mxu0 %v721_v51  ;;  %v1323_v37 = vmov 0.0  }
 0x1de   : > { %1189 = vmatpush3.msra.mxu0 %v721_v51 }
 0x1df   : > { %v464_v38 = vpop.permute.xlu1 %463 }
 0x1e0   : > { %v467_v39 = vmul.f32 %v464_v38, %v430_v35 }
 0x1e2   : > { %639 = vmatmul.mubr.f32.gmra.mxu0 %v467_v39 }
 0x1e4   : > { %v494_v40 = vpop.permute.xlu1 %493 }
 0x1e5   : > { %v497_v41 = vmul.f32 %v494_v40, %v430_v35 }
 0x1e7   : > { %713 = vmatprep.mubr.f32.mxu1 %v497_v41 }
 0x1e9   : > { %v484_v42 = vpop.permute.xlu1 %483 }
 0x1ea   : > { %v487_v43 = vmul.f32 %v484_v42, %v430_v35 }
 0x1ec   : > { %714 = vmatmul.mubr.f32.gmra.mxu1 %v487_v43 }
 0x28f   : > { %v1120_v52 = vpop.f32.mrf.mxu0 }
 0x291   : > { %v1121_v53 = vpop.f32.mrf.mxu0 }
 0x292   : > { %v1122_v54 = vadd.f32 %v1121_v53, %v1120_v52 }
 0x294   : > { %v636_v58 = vadd.f32 %v1122_v54, %v1067_v55 }
 0x298   : > { %v1158_v56 = vpop.f32.mrf.mxu1 }
 0x29a   : > { %v1159_v57 = vpop.f32.mrf.mxu1 }
 0x29b   : > { %v1160_v59 = vadd.f32 %v1159_v57, %v1158_v56 }
 0x29d   : > { %v711_v60 = vadd.f32 %v1160_v59, %v636_v58 }
 0x29f   : > { %v719_v61 = vmax.f32 %v711_v60, 0.0 }
 0x2a1   : > { %1190 = vmatprep.mubr.msk.f32.mxu0 %vm736_vm2, %v719_v61 }
 0x2a2   : > { %v1123_v62 = vpop.f32.mrf.mxu0 }
 0x2a4   : > { %v1124_v63 = vpop.f32.mrf.mxu0 }
 0x2a5   : > { %v1125_v0 = vadd.f32 %v1124_v63, %v1123_v62 }
 0x2a7   : > { %v641_v3 = vadd.f32 %v1125_v0, %v1067_v55  ;;  %v932_v0 = vld [vmem:[#allocation5] sm:$0x1] }
 0x2ac   : > { %v1161_v1 = vpop.f32.mrf.mxu1 }
 0x2ae   : > { %v1162_v2 = vpop.f32.mrf.mxu1 }
 0x2af   : > { %v1163_v4 = vadd.f32 %v1162_v2, %v1161_v1 }
 0x2b1   : > { %v716_v5 = vadd.f32 %v1163_v4, %v641_v3 }
 0x2b3   : > { %v720_v6 = vmax.f32 %v716_v5, 0.0 }
 0x2b5   : > { %1191 = vmatmul.mubr.msk.f32.vlgmr.msra.gmra.mxu0 %vm736_vm2, %v720_v6 }
 0x375   : > { %v1192_v8 = vpop.f32.mrf.mxu0 }
 0x376   : > { %v815_v9 = vadd.f32 %v1192_v8, %v1068_v7 }
 0x377   : > { %v809_v10 = vpop.f32.mrf.mxu0 }
 0x378   : > { %v819_v13 = vmax.f32 %v815_v9, 0.0  ;;  %v810_v15 = vadd.f32 %v1068_v7, %v809_v10 }
 0x37a   : > { %v818_v18 = vmax.f32 %v810_v15, 0.0  ;;  %v828_v19 = vmul.f32 %v1071_v11, %v819_v13 }
 0x37c   : > { %v832_v12 = vsel %vm736_vm2, %v828_v19, 0.0  ;;  %v827_v20 = vmul.f32 %v1071_v11, %v818_v18 }
 0x37d   : > { %833 = vadd.xlane.f32.xlu0 %v832_v12 }
 0x37e   : > { %v829_v21 = vsel %vm736_vm2, %v827_v20, 0.0 }
 0x37f   : > { %830 = vadd.xlane.f32.xlu1 %v829_v21 }
 0x406   : > { %v834_v23 = vpop.xlane.xlu0 %833 }
 0x407   : > { %v843_v24 = vadd.f32 %v1072_v22, %v834_v23  ;;  %v918_v23 = vld [vmem:[#allocation3] sm:$0x1] }
 0x408   : > { %v831_v25 = vpop.xlane.xlu1 %830 }
 0x409   : > { %v1074_v26 = vmul.f32 -1.442695, %v843_v24  ;;  %v842_v27 = vadd.f32 %v1072_v22, %v831_v25 }
 0x40b   : > { %1238 = vpow2.f32 %v1074_v26  ;;  %v1073_v28 = vmul.f32 -1.442695, %v842_v27 }
 0x40d   : > { %1240 = vpow2.f32 %v1073_v28 }
 0x418   : > { %v1239_v29 = vpop.eup %1238 }
 0x419   : > { %v851_v30 = vadd.f32 1.0, %v1239_v29 }
 0x41a   : > { %v1241_v31 = vpop.eup %1240 }
 0x41b   : > { %1242 = vrcp.f32 %v851_v30  ;;  %v850_v32 = vadd.f32 1.0, %v1241_v31 }
 0x41d   : > { %1244 = vrcp.f32 %v850_v32 }
 0x428   : > { %v1243_v34 = vpop.eup %1242 }
 0x429   : > { %1246 = vlog2.f32 %v1243_v34  ;;  %v879_v35 = vsub.f32 1.0, %v1243_v34  ;;  %vm899_vm3 = vcmp.ge.f32.partialorder %v1243_v34, 0.5 }
 0x42a   : > { %v1245_v36 = vpop.eup %1244  ;;  %v1078_v38 = vsel %vm899_vm3, 1.0, %v1323_v37 }
 0x42b   : > { %1248 = vlog2.f32 %v879_v35  ;;  %vm911_vm5 = vcmp.eq.f32.partialorder %v1078_v38, 0.0  ;;  %v878_v39 = vsub.f32 1.0, %v1245_v36  ;;  %vm898_vm6 = vcmp.ge.f32.partialorder %v1245_v36, 0.5 }
 0x42c   : > { %v1080_v40 = vsel %vm911_vm5, 1.0, %v1323_v37  ;;  %1250 = vlog2.f32 %v1245_v36  ;;  %v1077_v41 = vsel %vm898_vm6, 1.0, %v1323_v37 }
 0x42d   : > { %v917_v42 = vsel %vm870_vm4, %v1080_v40, 0.0  ;;  %1252 = vlog2.f32 %v878_v39  ;;  %vm910_vm8 = vcmp.eq.f32.partialorder %v1077_v41, 1.0 }
 0x42e   : > { %v1079_v43 = vsel %vm910_vm8, 1.0, %v1323_v37  ;;  %v934_v45 = vsel %vm919_vm7, %v917_v42, 0.0 }
 0x42f   : > { %v916_v44 = vsel %vm870_vm4, %v1079_v43, 0.0 }
 0x430   : > { %v933_v46 = vsel %vm919_vm7, %v916_v44, 0.0 }
 0x431   : > { %v935_v47 = vadd.f32 %v934_v45, %v933_v46 }
 0x433   : > { %v936_v48 = vrot.slane %v935_v47, 4 }
 0x435   : > { %v937_v49 = vadd.f32 %v936_v48, %v935_v47 }
 0x436   : > { %v1247_v50 = vpop.eup %1246 }
 0x437   : > { %v875_v51 = vmul.f32 0.6931472, %v1247_v50  ;;  %v938_v52 = vrot.slane %v937_v49, 2 }
 0x438   : > { %v1249_v53 = vpop.eup %1248 }
 0x439   : > { %v1251_v54 = vpop.eup %1250  ;;  %v877_v55 = vmax.f32 %v875_v51, -100.0  ;;  %v883_v56 = vmul.f32 0.6931472, %v1249_v53  ;;  %v939_v57 = vadd.f32 %v938_v52, %v937_v49 }
 0x43a   : > { %v1253_v58 = vpop.eup %1252  ;;  %v873_v59 = vmul.f32 0.6931472, %v1251_v54 }
 0x43b   : > { %v885_v60 = vmax.f32 %v883_v56, -100.0  ;;  %v887_v61 = vmul.f32 0.0, %v877_v55  ;;  %v881_v62 = vmul.f32 0.6931472, %v1253_v58  ;;  %v940_v63 = vrot.slane %v939_v57, 1 }
 0x43c   : > { %v876_v5 = vmax.f32 %v873_v59, -100.0 }
 0x43d   : > { %v893_v1 = vadd.f32 %v887_v61, %v885_v60  ;;  %v884_v2 = vmax.f32 %v881_v62, -100.0  ;;  %v941_v3 = vadd.f32 %v940_v63, %v939_v57 }
 0x43f   : > { %v895_v4 = vsub.f32 0.0, %v893_v1  ;;  %v890_v6 = vmul.f32 0.0, %v884_v2  ;;  %v942_v7 = vadd.f32 %v941_v3, %v932_v0 }
 0x441   : > { %v892_v8 = vadd.f32 %v890_v6, %v876_v5  ;;  %943 = vst.msk [vmem:[#allocation5] sm:$0x1] %vm930_vm9, %v942_v7  ;;  %v897_v9 = vsel %vm870_vm4, %v895_v4, 0.0 }
 0x442   : > { %v921_v13 = vsel %vm919_vm7, %v897_v9, 0.0 }
 0x443   : > { %v894_v10 = vsub.f32 0.0, %v892_v8 }
 0x445   : > { %v896_v11 = vsel %vm870_vm4, %v894_v10, 0.0 }
 0x446   : > { %v920_v15 = vsel %vm919_vm7, %v896_v11, 0.0 }
 0x447   : > { %v922_v18 = vadd.f32 %v921_v13, %v920_v15 }
 0x449   : > { %v923_v19 = vrot.slane %v922_v18, 4 }
 0x44b   : > { %v924_v12 = vadd.f32 %v923_v19, %v922_v18 }
 0x44d   : > { %v925_v20 = vrot.slane %v924_v12, 2 }
 0x44f   : > { %v926_v21 = vadd.f32 %v925_v20, %v924_v12 }
 0x451   : > { %v927_v22 = vrot.slane %v926_v21, 1 }
 0x453   : > { %v928_v24 = vadd.f32 %v927_v22, %v926_v21  ;;  %947 = sbr.rel (%p1081_p5) target bundleno = 1122 (0x462), region = 68 }
 0x455   : > { %v929_v25 = vadd.f32 %v928_v24, %v918_v23 }
 0x457   : > { %931 = vst.msk [vmem:[#allocation3] sm:$0x1] %vm930_vm9, %v929_v25 }
 0x458   : > { %v951_v27 = vld [vmem:[#allocation5] sm:$0x1] }
 0x459   : > { %v952_v29 = vmul.f32 5.0, %v951_v27 }
 0x45b   : > { %953 = vst.msk [vmem:[#allocation5] sm:$0x1] %vm930_vm9, %v952_v29 }
 0x45e   : > { %v948_v26 = vld [vmem:[#allocation3] sm:$0x1] }
 0x45f   : > { %v949_v28 = vmul.f32 0.05, %v948_v26 }
 0x461   : > { %950 = vst.msk [vmem:[#allocation3] sm:$0x1] %vm930_vm9, %v949_v28 }
 0x462 PF: > { %p1201_p6 = scmp.eq.s32.totalorder %s1395_s20, 1  ;;  %s1324_s14 = smov [#allocation3]  }
 0x463   : > { %s961_s15 = sshll.u32 %s1324_s14, 4  ;;  %s1325_s16 = smov [#allocation5]   ;;  %s962_s15 = int_to_ptr.vmem [resolvable:$true] %s961_s15 }
 0x464   : > { %s972_s17 = sshll.u32 %s1325_s16, 4  ;;  %s1254_s18 = scalar_lea.vmem %s962_s15, 16  ;;  %s973_s17 = int_to_ptr.vmem [resolvable:$true] %s972_s17 }
 0x465   : > { %p1255_p7 = scmp.ne.s32.totalorder %s962_s15, %s1254_s18  ;;  %s1260_s9 = scalar_lea.vmem %s962_s15, 32 }
 0x466   : > { %p1261_p10 = scmp.lt.s32.totalorder %s962_s15, %s962_s15  ;;  %p1262_p11 = scmp.lt.s32.totalorder %s1260_s9, %s1254_s18 }
 0x467   : > { %p1256_p8 = pnand %p1255_p7, %p1201_p6 }
 0x468   : > { %p1263_p12 = por %p1262_p11, %p1261_p10 }
 0x469   : > { %p1257_p9 = pneg %p1256_p8 }
 0x46b   : > { %p1264_p13 = pnand %p1263_p12, %p1257_p9 }
 0x46d   : > { %1267 = shalt.err (!%p1264_p13)
}
 0x46e   : > { %1194 = dma.vmem_to_hbm [thread:$0]  (%p1201_p6), %s962_s15, 16, %s1725_s10, [#allocation4]  }
 0x46f   : > { %s1278_s25 = scalar_lea.vmem %s973_s17, 16  ;;  %s1284_s26 = scalar_lea.vmem %s973_s17, 32 }
 0x470   : > { %p1279_p0 = scmp.ne.s32.totalorder %s973_s17, %s1278_s25  ;;  %p1285_p3 = scmp.lt.s32.totalorder %s973_s17, %s973_s17 }
 0x471   : > { %p1286_p4 = scmp.lt.s32.totalorder %s1284_s26, %s1278_s25 }
 0x472   : > { %p1280_p1 = pnand %p1279_p0, %p1201_p6 }
 0x473   : > { %p1287_p5 = por %p1286_p4, %p1285_p3 }
 0x474   : > { %p1281_p2 = pneg %p1280_p1 }
 0x476   : > { %p1288_p7 = pnand %p1287_p5, %p1281_p2 }
 0x478   : > { %1291 = shalt.err (!%p1288_p7)
}
 0x479   : > { %1196 = dma.vmem_to_hbm [thread:$0]  (%p1201_p6), %s973_s17, 16, %s1726_s11, [#allocation6]  }
 0x47a   : > { %1307 = dma.done.wait (%p1201_p6), [#allocation4], 16  }
 0x47b   : > { %1309 = vsyncadd (%p1201_p6), [#allocation4], 4294967280 }
 0x47c   : > { %1311 = dma.done.wait (%p1201_p6), [#allocation6], 16  }
 0x47d   : > { %1313 = vsyncadd (%p1201_p6), [#allocation6], 4294967280 }
 0x47e PF: > { %s26_s19 = sadd.s32 1, %s1316_s19  }
 0x47f   : > { %p23_p8 = scmp.ge.s32.totalorder %s26_s19, 4  }
 0x481   :  { %25 = sbr.rel (!%p23_p8) target bundleno = 5 (0x5), region = 112 }
 0x486   :  { %989 = vsyncpa [#allocation4], 1 }
 0x487   :  { %991 = vsyncpa [#allocation4 + $0x1], 1 }
 0x488   :  { %992 = vsyncpa [#allocation6], 1 }

</bundles_post_ra>
